<compile_context>
chip_gen: v7x
topology: tpu7x:2x2x1
jax: 0.10.0
libtpu: 0.0.40
codegen_flags: <defaults>
</compile_context>

<pallas_src>
import functools

import jax
import jax.numpy as jnp
from jax.experimental import pallas as pl
from jax.experimental.pallas import tpu as pltpu

EPS = 1e-5  # torch GroupNorm default

_CPARAMS = pltpu.CompilerParams(
    dimension_semantics=("parallel",),
    vmem_limit_bytes=48 * 1024 * 1024,
)


# ----------------------------- in-kernel math ------------------------------ #

def _erf(x):
    # Abramowitz & Stegun 7.1.26 rational approximation, |err| < 1.5e-7.
    # (Kept instead of lax.erf for guaranteed Mosaic lowering; the single exp
    #  lands on the EUP.)
    a1, a2, a3, a4, a5 = 0.254829592, -0.284496736, 1.421413741, -1.453152027, 1.061405429
    p = 0.3275911
    sgn = jnp.where(x >= 0.0, 1.0, -1.0)
    ax = jnp.abs(x)
    t = 1.0 / (1.0 + p * ax)
    poly = ((((a5 * t + a4) * t + a3) * t + a2) * t + a1) * t
    return sgn * (1.0 - poly * jnp.exp(-ax * ax))


def _gelu(x):
    # exact (erf-based) GELU, matching torch.nn.GELU() default
    return 0.5 * x * (1.0 + _erf(x * 0.7071067811865476))


def _group_norm(y, gamma, beta, gmat):
    # y: (S, C) f32.  gmat: (C, C) precomputed on the host:
    #   gmat[i, j] = 1/(S*cg) if channels i and j share a group, else 0,
    # so  sums @ gmat  yields the per-channel group mean directly.
    s1 = jnp.sum(y, axis=0, keepdims=True)                             # (1, C)
    mean = jnp.dot(s1, gmat, preferred_element_type=jnp.float32)       # (1, C)
    d = y - mean
    var = jnp.dot(jnp.sum(d * d, axis=0, keepdims=True), gmat,
                  preferred_element_type=jnp.float32)                  # biased var
    var = jnp.maximum(var, 0.0)
    inv = jax.lax.rsqrt(var + EPS)
    return d * inv * gamma + beta


# -------------------------------- kernels ---------------------------------- #

def _pw_gn_gelu_kernel(x_ref, w_ref, b_ref, g_ref, be_ref, gm_ref, o_ref):
    # attn_fuse: 1x1x1 conv (bf16 MXU) + GroupNorm + GELU.
    # x_ref block (1, S, Cin) bf16, w_ref (Cin, Cout) bf16.
    y = jnp.dot(x_ref[0], w_ref[...], preferred_element_type=jnp.float32) + b_ref[...]
    y = _group_norm(y, g_ref[...], be_ref[...], gm_ref[...])
    o_ref[0] = _gelu(y).astype(o_ref.dtype)


def _dw_gn_gelu_pw_kernel(xp_ref, dw_ref, db_ref, g_ref, be_ref, gm_ref,
                          pw_ref, pb_ref, o_ref, *, D, H, W):
    # Depthwise 3x3x3 over the padded VMEM-resident tile (no HBM im2col):
    # xp_ref block (1, D+2, H+2, W+2, C) f32, dw_ref (27, C) f32,
    # followed by GroupNorm + GELU and the fused trailing 1x1x1 conv
    # (pw_ref (C, C) bf16) so the lane-sparse dw output never hits HBM.
    C = xp_ref.shape[-1]
    acc = jnp.zeros((D, H, W, C), jnp.float32)
    t = 0
    for kd in range(3):
        for kh in range(3):
            for kw in range(3):
                acc = acc + xp_ref[0, kd:kd + D, kh:kh + H, kw:kw + W, :] * dw_ref[t]
                t += 1
    y = acc.reshape(D * H * W, C) + db_ref[...]
    y = _gelu(_group_norm(y, g_ref[...], be_ref[...], gm_ref[...]))
    z = jnp.dot(y.astype(jnp.bfloat16), pw_ref[...],
                preferred_element_type=jnp.float32) + pb_ref[...]
    o_ref[0] = z.astype(o_ref.dtype)


def _conv3_gn_gelu_seg_kernel(x_ref, w_ref, b_ref, g_ref, be_ref, gm_ref,
                              sw_ref, sb_ref, o_ref):
    # final_up dense 3x3x3 conv collapsed into ONE K=27*Cin bf16 MXU matmul,
    # then GroupNorm + GELU and the fused seg_head 1x1x1 conv.
    # x_ref block (1, S, 27*Cin) bf16, w_ref (27*Cin, Cout) bf16,
    # sw_ref (Cout, num_classes) bf16.
    y = jnp.dot(x_ref[0], w_ref[...], preferred_element_type=jnp.float32) + b_ref[...]
    y = _gelu(_group_norm(y, g_ref[...], be_ref[...], gm_ref[...]))
    z = jnp.dot(y.astype(jnp.bfloat16), sw_ref[...],
                preferred_element_type=jnp.float32) + sb_ref[...]
    o_ref[0] = z.astype(o_ref.dtype)


# ------------------------------- wrappers ----------------------------------- #

def _vec_spec(c):
    return pl.BlockSpec((1, c), lambda n: (0, 0))


def _mat_spec(r, c):
    return pl.BlockSpec((r, c), lambda n: (0, 0))


def _gn_matrix(C, groups, S):
    # Host-side precompute of the GroupNorm group-averaging matrix.
    cg = C // groups
    g = jnp.arange(C, dtype=jnp.int32) // cg
    return (g[:, None] == g[None, :]).astype(jnp.float32) / jnp.float32(S * cg)


def pointwise_gn_gelu(x, w, b, gamma, beta, groups):
    # Conv3d(Cin, Cout, 1) + GroupNorm + GELU.
    N, D, H, W, Cin = x.shape
    Cout = w.shape[1]
    S = D * H * W
    xf = x.reshape(N, S, Cin).astype(jnp.bfloat16)
    gmat = _gn_matrix(Cout, groups, S)
    out = pl.pallas_call(
        _pw_gn_gelu_kernel,
        out_shape=jax.ShapeDtypeStruct((N, S, Cout), jnp.float32),
        grid=(N,),
        in_specs=[pl.BlockSpec((1, S, Cin), lambda n: (n, 0, 0)),
                  _mat_spec(Cin, Cout),
                  _vec_spec(Cout), _vec_spec(Cout), _vec_spec(Cout),
                  _mat_spec(Cout, Cout)],
        out_specs=pl.BlockSpec((1, S, Cout), lambda n: (n, 0, 0)),
        compiler_params=_CPARAMS,
    )(xf, w.astype(jnp.bfloat16), b, gamma, beta, gmat)
    return out.reshape(N, D, H, W, Cout)


def dw3_gn_gelu_pw(x, dw_w, dw_b, gamma, beta, pw_w, pw_b, groups):
    # Conv3d(C, C, 3, padding=1, groups=C) + GroupNorm + GELU + Conv3d(C, C, 1),
    # all fused in one kernel.  dw_w: (27, C) with taps ordered (kd, kh, kw).
    N, D, H, W, C = x.shape
    S = D * H * W
    xp = jnp.pad(x, ((0, 0), (1, 1), (1, 1), (1, 1), (0, 0)))
    gmat = _gn_matrix(C, groups, S)
    kern = functools.partial(_dw_gn_gelu_pw_kernel, D=D, H=H, W=W)
    out = pl.pallas_call(
        kern,
        out_shape=jax.ShapeDtypeStruct((N, S, C), jnp.float32),
        grid=(N,),
        in_specs=[pl.BlockSpec((1, D + 2, H + 2, W + 2, C),
                               lambda n: (n, 0, 0, 0, 0)),
                  _mat_spec(27, C),
                  _vec_spec(C), _vec_spec(C), _vec_spec(C),
                  _mat_spec(C, C),
                  _mat_spec(C, C),
                  _vec_spec(C)],
        out_specs=pl.BlockSpec((1, S, C), lambda n: (n, 0, 0)),
        compiler_params=_CPARAMS,
    )(xp, dw_w, dw_b, gamma, beta, gmat, pw_w.astype(jnp.bfloat16), pw_b)
    return out.reshape(N, D, H, W, C)


def conv3_gn_gelu_seg(x, w, b, gamma, beta, seg_w, seg_b, groups):
    # Conv3d(Cin, Cout, 3, padding=1) + GroupNorm + GELU + Conv3d(Cout, ncls, 1).
    # Dense 3x3x3 is lowered to a single (S, 27*Cin) @ (27*Cin, Cout) matmul.
    # w: (27, Cin, Cout), taps ordered (kd, kh, kw) — this matches a PyTorch
    # weight (Cout, Cin, 3, 3, 3) transposed to (kd, kh, kw, Cin, Cout) then
    # reshaped to (27*Cin, Cout).
    N, D, H, W, Cin = x.shape
    Cout = w.shape[-1]
    ncls = seg_w.shape[-1]
    S = D * H * W
    xp = jnp.pad(x, ((0, 0), (1, 1), (1, 1), (1, 1), (0, 0)))
    taps = []
    for kd in range(3):
        for kh in range(3):
            for kw in range(3):
                taps.append(
                    xp[:, kd:kd + D, kh:kh + H, kw:kw + W, :].reshape(N, S, Cin))
    xcol = jnp.concatenate(taps, axis=-1).astype(jnp.bfloat16)   # (N, S, 27*Cin)
    gmat = _gn_matrix(Cout, groups, S)
    out = pl.pallas_call(
        _conv3_gn_gelu_seg_kernel,
        out_shape=jax.ShapeDtypeStruct((N, S, ncls), jnp.float32),
        grid=(N,),
        in_specs=[pl.BlockSpec((1, S, 27 * Cin), lambda n: (n, 0, 0)),
                  _mat_spec(27 * Cin, Cout),
                  _vec_spec(Cout), _vec_spec(Cout), _vec_spec(Cout),
                  _mat_spec(Cout, Cout),
                  _mat_spec(Cout, ncls),
                  _vec_spec(ncls)],
        out_specs=pl.BlockSpec((1, S, ncls), lambda n: (n, 0, 0)),
        compiler_params=_CPARAMS,
    )(xcol, w.astype(jnp.bfloat16).reshape(27 * Cin, Cout), b, gamma, beta, gmat,
      seg_w.astype(jnp.bfloat16), seg_b)
    return out.reshape(N, D, H, W, ncls)


# -------------------------- model (glue + kernels) -------------------------- #

def _upsample_to(x, spatial):
    N, _, _, _, C = x.shape
    return jax.image.resize(x, (N,) + tuple(spatial) + (C,), method="trilinear")


def decoder_block3d(x, skip, p, out_ch):
    x = _upsample_to(x, skip.shape[1:4])          # F.interpolate(align_corners=False)
    x = jnp.concatenate([x, skip], axis=-1)       # torch.cat(dim=1) in NDHWC
    g = min(16, out_ch)
    x = pointwise_gn_gelu(x, p["fuse_w"], p["fuse_b"], p["fuse_g"], p["fuse_be"], g)
    x = dw3_gn_gelu_pw(x, p["dw_w"], p["dw_b"], p["dw_g"], p["dw_be"],
                       p["pw_w"], p["pw_b"], g)
    return x


def refined_decoder_head_3d(features, params, dec_ch):
    c1, c2, c3, c4 = features
    x = decoder_block3d(c4, c3, params["decode3"], dec_ch[0])
    x = decoder_block3d(x, c2, params["decode2"], dec_ch[1])
    x = decoder_block3d(x, c1, params["decode1"], dec_ch[2])
    # final_up: Upsample(x2) -> Conv3d(3x3x3) -> GN -> GELU, fused with seg_head
    N, D, H, W, _ = x.shape
    x = _upsample_to(x, (2 * D, 2 * H, 2 * W))
    g = min(16, dec_ch[3])
    x = conv3_gn_gelu_seg(x, params["up_w"], params["up_b"], params["up_g"],
                          params["up_be"], params["seg_w"], params["seg_b"], g)
    return {"main": x}


# ---------------------------- parameter init -------------------------------- #

def _block_params(key, in_ch, skip_ch, out_ch):
    ks = jax.random.split(key, 10)
    cin = in_ch + skip_ch
    return {
        "fuse_w": jax.random.normal(ks[0], (cin, out_ch), jnp.float32) / jnp.sqrt(float(cin)),
        "fuse_b": 0.01 * jax.random.normal(ks[1], (1, out_ch), jnp.float32),
        "fuse_g": 1.0 + 0.1 * jax.random.normal(ks[2], (1, out_ch), jnp.float32),
        "fuse_be": 0.1 * jax.random.normal(ks[3], (1, out_ch), jnp.float32),
        # depthwise taps ordered (kd, kh, kw): row t = kd*9 + kh*3 + kw
        "dw_w": jax.random.normal(ks[4], (27, out_ch), jnp.float32) / jnp.sqrt(27.0),
        "dw_b": 0.01 * jax.random.normal(ks[5], (1, out_ch), jnp.float32),
        "dw_g": 1.0 + 0.1 * jax.random.normal(ks[6], (1, out_ch), jnp.float32),
        "dw_be": 0.1 * jax.random.normal(ks[7], (1, out_ch), jnp.float32),
        "pw_w": jax.random.normal(ks[8], (out_ch, out_ch), jnp.float32) / jnp.sqrt(float(out_ch)),
        "pw_b": 0.01 * jax.random.normal(ks[9], (1, out_ch), jnp.float32),
    }


def init_params(key, enc_ch, dec_ch, num_classes):
    k = jax.random.split(key, 4)
    p = {
        "decode3": _block_params(k[0], enc_ch[3], enc_ch[2], dec_ch[0]),
        "decode2": _block_params(k[1], dec_ch[0], enc_ch[1], dec_ch[1]),
        "decode1": _block_params(k[2], dec_ch[1], enc_ch[0], dec_ch[2]),
    }
    ku = jax.random.split(k[3], 6)
    cin, cout = dec_ch[2], dec_ch[3]
    p["up_w"] = jax.random.normal(ku[0], (27, cin, cout), jnp.float32) / jnp.sqrt(27.0 * cin)
    p["up_b"] = 0.01 * jax.random.normal(ku[1], (1, cout), jnp.float32)
    p["up_g"] = 1.0 + 0.1 * jax.random.normal(ku[2], (1, cout), jnp.float32)
    p["up_be"] = 0.1 * jax.random.normal(ku[3], (1, cout), jnp.float32)
    p["seg_w"] = jax.random.normal(ku[4], (cout, num_classes), jnp.float32) / jnp.sqrt(float(cout))
    p["seg_b"] = 0.01 * jax.random.normal(ku[5], (1, num_classes), jnp.float32)
    return p


# ---------------------------------- main ------------------------------------ #

if __name__ == "__main__":
    key = jax.random.PRNGKey(0)
    N = 2
    enc_ch = (8, 16, 32, 64)      # channels of c1..c4
    dec_ch = (32, 16, 8, 8)       # decoder_channels
    num_classes = 3

    kc1, kc2, kc3, kc4, kp = jax.random.split(key, 5)
    # encoder feature pyramid (NDHWC), coarser as we go deeper
    c1 = jax.random.normal(kc1, (N, 8, 8, 8, enc_ch[0]), jnp.float32)
    c2 = jax.random.normal(kc2, (N, 4, 4, 4, enc_ch[1]), jnp.float32)
    c3 = jax.random.normal(kc3, (N, 2, 2, 2, enc_ch[2]), jnp.float32)
    c4 = jax.random.normal(kc4, (N, 1, 1, 1, enc_ch[3]), jnp.float32)

    params = init_params(kp, enc_ch, dec_ch, num_classes)

    out = refined_decoder_head_3d((c1, c2, c3, c4), params, dec_ch)
    main = out["main"]
    jax.block_until_ready(main)

    assert main.shape == (N, 16, 16, 16, num_classes), main.shape
    assert bool(jnp.all(jnp.isfinite(main)))
    print("KERNEL_OK")
</pallas_src>

<mosaic_0001>
module attributes {stable_mosaic.version = 11 : i64} {
  func.func @_pw_gn_gelu_kernel(%arg0: i32, %arg1: memref<1x8x96xbf16, #tpu.memory_space<vmem>>, %arg2: memref<96x32xbf16, #tpu.memory_space<vmem>>, %arg3: memref<1x32xf32, #tpu.memory_space<vmem>>, %arg4: memref<1x32xf32, #tpu.memory_space<vmem>>, %arg5: memref<1x32xf32, #tpu.memory_space<vmem>>, %arg6: memref<32x32xf32, #tpu.memory_space<vmem>>, %arg7: memref<1x8x32xf32, #tpu.memory_space<vmem>>) attributes {dimension_semantics = [#tpu.dimension_semantics<parallel>], iteration_bounds = array<i64: 2>, scalar_prefetch = 0 : i64, scratch_operands = 0 : i64, tpu.core_type = #tpu.core_type<tc>, window_params = [{transform_indices = @transform_0, window_bounds = array<i64: 1, 8, 96>}, {pipeline_mode = #tpu.pipeline_mode<synchronous>, transform_indices = @transform_1, window_bounds = array<i64: 96, 32>}, {pipeline_mode = #tpu.pipeline_mode<synchronous>, transform_indices = @transform_2, window_bounds = array<i64: 1, 32>}, {pipeline_mode = #tpu.pipeline_mode<synchronous>, transform_indices = @transform_3, window_bounds = array<i64: 1, 32>}, {pipeline_mode = #tpu.pipeline_mode<synchronous>, transform_indices = @transform_4, window_bounds = array<i64: 1, 32>}, {pipeline_mode = #tpu.pipeline_mode<synchronous>, transform_indices = @transform_5, window_bounds = array<i64: 32, 32>}, {transform_indices = @transform_6, window_bounds = array<i64: 1, 8, 32>}]} {
    %c0 = arith.constant 0 : index
    %c0_0 = arith.constant 0 : index
    %c0_1 = arith.constant 0 : index
    %0 = vector.load %arg1[%c0, %c0_0, %c0_1] : memref<1x8x96xbf16, #tpu.memory_space<vmem>>, vector<1x8x96xbf16>
    %1 = vector.shape_cast %0 : vector<1x8x96xbf16> to vector<8x96xbf16>
    %c0_2 = arith.constant 0 : index
    %c0_3 = arith.constant 0 : index
    %2 = vector.load %arg2[%c0_2, %c0_3] : memref<96x32xbf16, #tpu.memory_space<vmem>>, vector<96x32xbf16>
    %cst = arith.constant dense<0.000000e+00> : vector<8x32xf32>
    %3 = tpu.matmul %1, %2, %cst {dimension_numbers = #tpu.dot_dimension_numbers<[1], [0], [0], [1], [0, 0, 1, 1], [], []>} : vector<8x96xbf16>, vector<96x32xbf16>, vector<8x32xf32> -> vector<8x32xf32>
    %c0_4 = arith.constant 0 : index
    %c0_5 = arith.constant 0 : index
    %4 = vector.load %arg3[%c0_4, %c0_5] : memref<1x32xf32, #tpu.memory_space<vmem>>, vector<1x32xf32>
    %5 = vector.broadcast %4 : vector<1x32xf32> to vector<8x32xf32>
    %6 = arith.addf %3, %5 : vector<8x32xf32>
    %c0_6 = arith.constant 0 : index
    %c0_7 = arith.constant 0 : index
    %7 = vector.load %arg4[%c0_6, %c0_7] : memref<1x32xf32, #tpu.memory_space<vmem>>, vector<1x32xf32>
    %c0_8 = arith.constant 0 : index
    %c0_9 = arith.constant 0 : index
    %8 = vector.load %arg5[%c0_8, %c0_9] : memref<1x32xf32, #tpu.memory_space<vmem>>, vector<1x32xf32>
    %c0_10 = arith.constant 0 : index
    %c0_11 = arith.constant 0 : index
    %9 = vector.load %arg6[%c0_10, %c0_11] : memref<32x32xf32, #tpu.memory_space<vmem>>, vector<32x32xf32>
    %cst_12 = arith.constant dense<0.000000e+00> : vector<32xf32>
    %10 = vector.multi_reduction <add>, %6, %cst_12 [0] : vector<8x32xf32> to vector<32xf32>
    %11 = vector.shape_cast %10 : vector<32xf32> to vector<1x32xf32>
    %cst_13 = arith.constant dense<0.000000e+00> : vector<1x32xf32>
    %12 = tpu.matmul %11, %9, %cst_13 {dimension_numbers = #tpu.dot_dimension_numbers<[1], [0], [0], [1], [0, 0, 1, 1], [], []>} : vector<1x32xf32>, vector<32x32xf32>, vector<1x32xf32> -> vector<1x32xf32>
    %13 = vector.broadcast %12 : vector<1x32xf32> to vector<8x32xf32>
    %14 = arith.subf %6, %13 : vector<8x32xf32>
    %15 = arith.mulf %14, %14 : vector<8x32xf32>
    %cst_14 = arith.constant dense<0.000000e+00> : vector<32xf32>
    %16 = vector.multi_reduction <add>, %15, %cst_14 [0] : vector<8x32xf32> to vector<32xf32>
    %17 = vector.shape_cast %16 : vector<32xf32> to vector<1x32xf32>
    %cst_15 = arith.constant dense<0.000000e+00> : vector<1x32xf32>
    %18 = tpu.matmul %17, %9, %cst_15 {dimension_numbers = #tpu.dot_dimension_numbers<[1], [0], [0], [1], [0, 0, 1, 1], [], []>} : vector<1x32xf32>, vector<32x32xf32>, vector<1x32xf32> -> vector<1x32xf32>
    %cst_16 = arith.constant 0.000000e+00 : f32
    %19 = vector.broadcast %cst_16 : f32 to vector<1x32xf32>
    %20 = arith.maximumf %18, %19 : vector<1x32xf32>
    %cst_17 = arith.constant 9.99999974E-6 : f32
    %21 = vector.broadcast %cst_17 : f32 to vector<1x32xf32>
    %22 = arith.addf %20, %21 : vector<1x32xf32>
    %23 = math.rsqrt %22 : vector<1x32xf32>
    %24 = vector.broadcast %23 : vector<1x32xf32> to vector<8x32xf32>
    %25 = arith.mulf %14, %24 : vector<8x32xf32>
    %26 = vector.broadcast %7 : vector<1x32xf32> to vector<8x32xf32>
    %27 = arith.mulf %25, %26 : vector<8x32xf32>
    %28 = vector.broadcast %8 : vector<1x32xf32> to vector<8x32xf32>
    %29 = arith.addf %27, %28 : vector<8x32xf32>
    %cst_18 = arith.constant 5.000000e-01 : f32
    %30 = vector.broadcast %cst_18 : f32 to vector<8x32xf32>
    %31 = arith.mulf %30, %29 : vector<8x32xf32>
    %cst_19 = arith.constant 0.707106769 : f32
    %32 = vector.broadcast %cst_19 : f32 to vector<8x32xf32>
    %33 = arith.mulf %29, %32 : vector<8x32xf32>
    %cst_20 = arith.constant 0.000000e+00 : f32
    %34 = vector.broadcast %cst_20 : f32 to vector<8x32xf32>
    %35 = arith.cmpf oge, %33, %34 : vector<8x32xf32>
    %cst_21 = arith.constant 1.000000e+00 : f32
    %cst_22 = arith.constant -1.000000e+00 : f32
    %36 = vector.broadcast %cst_21 : f32 to vector<8x32xf32>
    %37 = vector.broadcast %cst_22 : f32 to vector<8x32xf32>
    %38 = arith.select %35, %36, %37 : vector<8x32xi1>, vector<8x32xf32>
    %39 = math.absf %33 : vector<8x32xf32>
    %cst_23 = arith.constant 0.327591091 : f32
    %40 = vector.broadcast %cst_23 : f32 to vector<8x32xf32>
    %41 = arith.mulf %40, %39 : vector<8x32xf32>
    %cst_24 = arith.constant 1.000000e+00 : f32
    %42 = vector.broadcast %cst_24 : f32 to vector<8x32xf32>
    %43 = arith.addf %42, %41 : vector<8x32xf32>
    %cst_25 = arith.constant 1.000000e+00 : f32
    %44 = vector.broadcast %cst_25 : f32 to vector<8x32xf32>
    %45 = arith.divf %44, %43 : vector<8x32xf32>
    %cst_26 = arith.constant 1.06140542 : f32
    %46 = vector.broadcast %cst_26 : f32 to vector<8x32xf32>
    %47 = arith.mulf %46, %45 : vector<8x32xf32>
    %cst_27 = arith.constant -1.45315206 : f32
    %48 = vector.broadcast %cst_27 : f32 to vector<8x32xf32>
    %49 = arith.addf %47, %48 : vector<8x32xf32>
    %50 = arith.mulf %49, %45 : vector<8x32xf32>
    %cst_28 = arith.constant 1.42141378 : f32
    %51 = vector.broadcast %cst_28 : f32 to vector<8x32xf32>
    %52 = arith.addf %50, %51 : vector<8x32xf32>
    %53 = arith.mulf %52, %45 : vector<8x32xf32>
    %cst_29 = arith.constant -0.284496725 : f32
    %54 = vector.broadcast %cst_29 : f32 to vector<8x32xf32>
    %55 = arith.addf %53, %54 : vector<8x32xf32>
    %56 = arith.mulf %55, %45 : vector<8x32xf32>
    %cst_30 = arith.constant 0.254829586 : f32
    %57 = vector.broadcast %cst_30 : f32 to vector<8x32xf32>
    %58 = arith.addf %56, %57 : vector<8x32xf32>
    %59 = arith.mulf %58, %45 : vector<8x32xf32>
    %cst_31 = arith.constant 0.000000e+00 : f32
    %60 = vector.broadcast %cst_31 : f32 to vector<8x32xf32>
    %61 = arith.subf %60, %39 : vector<8x32xf32>
    %62 = arith.mulf %61, %39 : vector<8x32xf32>
    %63 = math.exp %62 : vector<8x32xf32>
    %64 = arith.mulf %59, %63 : vector<8x32xf32>
    %cst_32 = arith.constant 1.000000e+00 : f32
    %65 = vector.broadcast %cst_32 : f32 to vector<8x32xf32>
    %66 = arith.subf %65, %64 : vector<8x32xf32>
    %67 = arith.mulf %38, %66 : vector<8x32xf32>
    %cst_33 = arith.constant 1.000000e+00 : f32
    %68 = vector.broadcast %cst_33 : f32 to vector<8x32xf32>
    %69 = arith.addf %68, %67 : vector<8x32xf32>
    %70 = arith.mulf %31, %69 : vector<8x32xf32>
    %c0_34 = arith.constant 0 : index
    %c0_35 = arith.constant 0 : index
    %c0_36 = arith.constant 0 : index
    %71 = vector.load %arg7[%c0_34, %c0_35, %c0_36] : memref<1x8x32xf32, #tpu.memory_space<vmem>>, vector<1x8x32xf32>
    %72 = vector.shape_cast %71 : vector<1x8x32xf32> to vector<8x32xf32>
    %73 = vector.shape_cast %70 : vector<8x32xf32> to vector<1x8x32xf32>
    tpu.vector_store %arg7[%c0_34, %c0_35, %c0_36], %73 {strides = array<i32>} : memref<1x8x32xf32, #tpu.memory_space<vmem>>, vector<1x8x32xf32>,
    return
  }
  func.func @transform_0(%arg0: i32) -> (i32, i32, i32) {
    %c0_i32 = arith.constant 0 : i32
    %c0_i32_0 = arith.constant 0 : i32
    %c0_i32_1 = arith.constant 0 : i32
    return %arg0, %c0_i32, %c0_i32_0 : i32, i32, i32
  }
  func.func @transform_1(%arg0: i32) -> (i32, i32) {
    %c0_i32 = arith.constant 0 : i32
    %c0_i32_0 = arith.constant 0 : i32
    %c0_i32_1 = arith.constant 0 : i32
    return %c0_i32, %c0_i32_0 : i32, i32
  }
  func.func @transform_2(%arg0: i32) -> (i32, i32) {
    %c0_i32 = arith.constant 0 : i32
    %c0_i32_0 = arith.constant 0 : i32
    %c0_i32_1 = arith.constant 0 : i32
    return %c0_i32, %c0_i32_0 : i32, i32
  }
  func.func @transform_3(%arg0: i32) -> (i32, i32) {
    %c0_i32 = arith.constant 0 : i32
    %c0_i32_0 = arith.constant 0 : i32
    %c0_i32_1 = arith.constant 0 : i32
    return %c0_i32, %c0_i32_0 : i32, i32
  }
  func.func @transform_4(%arg0: i32) -> (i32, i32) {
    %c0_i32 = arith.constant 0 : i32
    %c0_i32_0 = arith.constant 0 : i32
    %c0_i32_1 = arith.constant 0 : i32
    return %c0_i32, %c0_i32_0 : i32, i32
  }
  func.func @transform_5(%arg0: i32) -> (i32, i32) {
    %c0_i32 = arith.constant 0 : i32
    %c0_i32_0 = arith.constant 0 : i32
    %c0_i32_1 = arith.constant 0 : i32
    return %c0_i32, %c0_i32_0 : i32, i32
  }
  func.func @transform_6(%arg0: i32) -> (i32, i32, i32) {
    %c0_i32 = arith.constant 0 : i32
    %c0_i32_0 = arith.constant 0 : i32
    %c0_i32_1 = arith.constant 0 : i32
    return %arg0, %c0_i32, %c0_i32_0 : i32, i32, i32
  }
}

</mosaic_0001>

<bundles_post_ra>
// kernel: tpu_custom_call.1
= control target key start
LH: loop header
LB: loop body
LE: loop exit
PB: predicated region body
PF: predicated region fallthrough
CT: control target
= control target key end

     0   :  { %11 = vsyncpa [#allocation3], 0  ;;  %s1039_s0 = inlined_call_operand.vmem [shape: bf16[2,8,96], index: 0, kind: input, shape index: {}]   ;;  %s1040_s1 = inlined_call_operand.vmem [shape: bf16[96,32], index: 1, kind: input, shape index: {}]   ;;  %s1041_s2 = inlined_call_operand.vmem [shape: f32[1,32], index: 2, kind: input, shape index: {}]   ;;  %s1042_s3 = inlined_call_operand.vmem [shape: f32[1,32], index: 3, kind: input, shape index: {}]   ;;  %s1043_s4 = inlined_call_operand.vmem [shape: f32[1,32], index: 4, kind: input, shape index: {}]   ;;  %s1044_s5 = inlined_call_operand.vmem [shape: f32[32,32], index: 5, kind: input, shape index: {}]   ;;  %s1045_s6 = inlined_call_operand.hbm [shape: f32[2,8,32], index: 6, kind: output, shape index: {}]  }
   0x1   :  { %13 = vsyncpa [#allocation3 + $0x1], 0  ;;  %s892_s21 = smov 0   ;;  %s894_s22 = smov 0  }
   0x2   :  { %s896_s23 = smov 0   ;;  %s898_s24 = smov 0  }
   0x3 LB: > { %s913_s25 = sadd.s32 4294967295, %s850_s24   ;;  %s644_s26 = sadd.s32 4294967294, %s850_s24   ;;  %s850_s24 = sphi %s898_s24, %s1051_s24   ;;  %s846_s23 = sphi %s896_s23, %s1050_s23   ;;  %s842_s22 = sphi %s894_s22, %s1049_s22   ;;  %s838_s21 = sphi %s892_s21, %s1048_s21  }
   0x4   : > { %s917_s27 = sadd.s32 1, %s850_s24   ;;  %s157_s28 = sadd.s32 1, %s846_s23 }
   0x5   : > { %s154_s29 = ssub.s32 %s850_s24, %s917_s27  ;;  %p167_p0 = scmp.ne.s32.totalorder %s846_s23, %s842_s22 }
   0x6   : > { %p155_p1 = scmp.eq.s32.totalorder %s154_s29, 0  ;;  %p168_p2 = scmp.eq.s32.totalorder %s913_s25, 1 }
   0x7   : > { %p173_p3 = scmp.ne.s32.totalorder %s842_s22, %s838_s21  ;;  %p174_p4 = scmp.eq.s32.totalorder %s644_s26, 1 }
   0x8   : > { %s928_s30 = scalar_select %p155_p1, %s846_s23, %s157_s28  }
   0x9   : > { %p930_p5 = por %p168_p2, %p167_p0  ;;  %p934_p6 = por %p174_p4, %p173_p3 }
   0xa   : > { %p647_p7 = scmp.ge.s32.totalorder %s850_s24, 1  ;;  %p214_p8 = scmp.lt.s32.totalorder %s850_s24, 3 }
   0xc   : > { %p215_p9 = pnand %p647_p7, %p214_p8 }
   0xd   : > { %v776_v0 = vld [vmem:[%s1040_s1] sm:$0xff] (!%p215_p9)   ;;  %v852_v1 = vmov (!%p215_p9), 0.0   ;;  %v777_v2 = vld [vmem:[%s1040_s1 + $0x8] sm:$0xff] (!%p215_p9)   ;;  %vm853_vm0 = vmmov (!%p215_p9), 0   ;;  %v778_v3 = vld [vmem:[%s1040_s1 + $0x10] sm:$0xff] (!%p215_p9)   ;;  %p243_p10 = scmp.lt.s32.totalorder (!%p215_p9), %s913_s25, 1  ;;  %v435_v28 = vlaneseq (!%p215_p9) }
   0xe   : > { %218 = sbr.rel (%p215_p9) target bundleno = 792 (0x318), region = 44  ;;  %683 = vmatprep.subr.bf16.mxu0 (!%p215_p9), %v852_v1  ;;  %695 = vmatprep.mubr.msk.bf16.mxu0 (!%p215_p9), %vm853_vm0, %v852_v1  ;;  %v779_v4 = vld [vmem:[%s1040_s1 + $0x18] sm:$0xff] (!%p215_p9)   ;;  %v780_v5 = vld [vmem:[%s1040_s1 + $0x20] sm:$0xff] (!%p215_p9)   ;;  %v781_v6 = vld [vmem:[%s1040_s1 + $0x28] sm:$0xff] (!%p215_p9)   ;;  %vm304_vm1 = vcmask (!%p215_p9), 785408   ;;  %v854_v11 = vmov (!%p215_p9), 0.0|0.0  }
   0xf   : > { %684 = vmatpush3.bf16.msra.mxu0 (!%p215_p9), %v776_v0  ;;  %707 = vmatprep.mubr.msk.f32.mxu1 (!%p215_p9), %vm853_vm0, %v852_v1  ;;  %v350_v8 = vld [vmem:[%s1044_s5] sm:$0xff] (!%p215_p9)  ;;  %v351_v9 = vld [vmem:[%s1044_s5 + $0x8] sm:$0xff] (!%p215_p9)  ;;  %v352_v12 = vld [vmem:[%s1044_s5 + $0x10] sm:$0xff] (!%p215_p9)  ;;  %vm354_vm2 = vcmask (!%p215_p9), 261120   ;;  %v436_v29 = vshrl.u32 (!%p215_p9), %v435_v28, 7  ;;  %s663_s12 = sshll.u32 (!%p215_p9), %s913_s25, 7 }
  0x10   : > { %685 = vmatprep.subr.bf16.mxu0 (!%p215_p9), %v852_v1  ;;  %v722_v10 = vpack.c.bf16 (!%p215_p9), %v351_v9, %v350_v8  ;;  %721 = vmatprep.subr.bf16.mxu1 (!%p215_p9), %v854_v11  ;;  %v353_v13 = vld [vmem:[%s1044_s5 + $0x18] sm:$0xff] (!%p215_p9)  ;;  %v650_v15 = vld [vmem:[%s1041_s2] ss:$0 sm:$0xff] (!%p215_p9) }
  0x11   : > { %v725_v14 = vpack.c.bf16 (!%p215_p9), %v353_v13, %v352_v12  ;;  %v437_v30 = vsub.s32 (!%p215_p9), 0, %v436_v29  ;;  %v660_v49 = vld [vmem:[%s1042_s3] ss:$0 sm:$0xff] (!%p215_p9) }
  0x12   : > { %723 = vmatpush3.bf16.msra.mxu1 (!%p215_p9), %v722_v10  ;;  %v661_v51 = vld [vmem:[%s1043_s4] ss:$0 sm:$0xff] (!%p215_p9) }
  0x13   : > { %686 = vmatpush3.bf16.msra.mxu0 (!%p215_p9), %v777_v2  ;;  %724 = vmatprep.subr.bf16.mxu1 (!%p215_p9), %v854_v11 }
  0x14   : > { %687 = vmatprep.subr.bf16.mxu0 (!%p215_p9), %v852_v1 }
  0x15   : > { %s244_s17 = scalar_select %p243_p10, %s913_s25, 1 }
  0x16   : > { %726 = vmatpush3.bf16.msra.mxu1 %v725_v14  ;;  %s856_s25 = smov [#allocation2]  }
  0x17   : > { %688 = vmatpush3.bf16.msra.mxu0 %v778_v3  ;;  %s649_s20 = sshll.u32 %s244_s17, 2  ;;  %727 = vmatprep.subr.bf16.mxu1 %v854_v11  ;;  %s996_s17 = scalar_lea.hbm %s1045_s6, %s663_s12 }
  0x18   : > { %689 = vmatprep.subr.bf16.mxu0 %v852_v1  ;;  %s246_s10 = scalar_lea.vmem %s1039_s0, %s649_s20  ;;  %s792_s20 = sshll.u32 %s856_s25, 4  ;;  %s793_s20 = int_to_ptr.vmem [resolvable:$false] %s792_s20 }
  0x19   : > { %v248_v7 = vld [vmem:[%s246_s10] sm:$0xf]  ;;  %s240_s10 = sand.u32 1, %s842_s22   ;;  %s794_s26 = scalar_lea.vmem %s793_s20, 256 }
  0x1a   : > { %s648_s11 = sshll.u32 %s240_s10, 3  ;;  %s572_s18 = scalar_lea.sflag [#allocation3], %s240_s10 }
  0x1b   : > { %690 = vmatpush3.bf16.msra.mxu0 %v779_v4  ;;  %s242_s13 = scalar_lea.vmem [#allocation2], %s648_s11 }
  0x1c   : > { %691 = vmatprep.subr.bf16.mxu0 %v852_v1  ;;  %s585_s14 = sshll.u32 %s242_s13, 4  ;;  %s998_s14 = int_to_ptr.vmem [resolvable:$true] %s585_s14 }
  0x1d   : > { %s788_s19 = scalar_lea.vmem %s998_s14, 128  ;;  %p795_p0 = scmp.lt.s32.totalorder %s998_s14, %s793_s20 }
  0x1e   : > { %p789_p11 = scmp.ne.s32.totalorder %s998_s14, %s788_s19  ;;  %p796_p1 = scmp.lt.s32.totalorder %s794_s26, %s788_s19 }
  0x1f   : > { %692 = vmatpush3.bf16.msra.mxu0 %v780_v5 }
  0x20   : > { %693 = vmatprep.subr.bf16.mxu0 %v852_v1  ;;  %p790_p12 = pnand %p789_p11, %p930_p5  ;;  %p797_p2 = por %p796_p1, %p795_p0 }
  0x22   : > { %p791_p13 = pneg %p790_p12 }
  0x23   : > { %694 = vmatpush3.bf16.msra.mxu0 %v781_v6 }
  0x24   : > { %p798_p3 = pnand %p797_p2, %p791_p13 }
  0x26   : > { %696 = vmatmul.mubr.msk.bf16.vlgmr.msra.gmra.mrb[0].mxu0 %vm304_vm1, %v248_v7 }
  0xf9   : > { %v342_v16 = vpop.f32.mrb[0].mxu0 }
  0xfa   : > { %v343_v17 = vadd.f32 %v650_v15, %v342_v16  ;;  %v697_v18 = vpop.f32.mrb[1].mxu0 }
  0xfb   : > { %v345_v19 = vpop.f32.mrb[2].mxu0 }
  0xfc   : > { %v355_v20 = vsel %vm354_vm2, %v343_v17, 0.0  ;;  %v698_v21 = vpop.f32.mrb[3].mxu0 }
  0xfd   : > { %v356_v22 = vrot.slane %v355_v20, 4 }
  0xff   : > { %v357_v23 = vadd.f32 %v356_v22, %v355_v20 }
 0x101   : > { %v358_v24 = vrot.slane %v357_v23, 2 }
 0x103   : > { %v359_v25 = vadd.f32 %v358_v24, %v357_v23 }
 0x105   : > { %v360_v26 = vrot.slane %v359_v25, 1 }
 0x107   : > { %v361_v27 = vadd.f32 %v360_v26, %v359_v25 }
 0x109   : > { %708 = vmatmul.mubr.msk.f32.vlgmr.msra.gmra.mrb[0].mxu1 %vm354_vm2, %v361_v27 }
 0x10a   : > { %729 = vmatpush3.bf16.msra.mxu1 %v722_v10  ;;  %718 = vmatprep.mubr.msk.f32.mxu1 %vm853_vm0, %v852_v1  ;;  %v855_v10 = vmov -1.0  }
 0x10b   : > { %730 = vmatprep.subr.bf16.mxu1 %v854_v11 }
 0x10e   : > { %732 = vmatpush3.bf16.msra.mxu1 %v725_v14 }
 0x1dc   : > { %v431_v31 = vpop.f32.mrb[0].mxu1 }
 0x1dd   : > { %v438_v32 = vrot.slane %v431_v31, %v437_v30  ;;  %v709_v33 = vpop.f32.mrb[1].mxu1 }
 0x1df   : > { %v439_v34 = vsub.f32 %v343_v17, %v438_v32 }
 0x1e1   : > { %v440_v35 = vmul.f32 %v439_v34, %v439_v34 }
 0x1e3   : > { %v441_v36 = vsel %vm354_vm2, %v440_v35, 0.0 }
 0x1e4   : > { %v442_v37 = vrot.slane %v441_v36, 4 }
 0x1e6   : > { %v443_v38 = vadd.f32 %v442_v37, %v441_v36 }
 0x1e8   : > { %v444_v39 = vrot.slane %v443_v38, 2 }
 0x1ea   : > { %v445_v40 = vadd.f32 %v444_v39, %v443_v38 }
 0x1ec   : > { %v446_v41 = vrot.slane %v445_v40, 1 }
 0x1ee   : > { %v447_v42 = vadd.f32 %v446_v41, %v445_v40 }
 0x1f0   : > { %719 = vmatmul.mubr.msk.f32.vlgmr.msra.gmra.mrb[2].mxu1 %vm354_vm2, %v447_v42 }
 0x2c3   : > { %v517_v43 = vpop.f32.mrb[2].mxu1 }
 0x2c4   : > { %v521_v44 = vmax.f32 %v517_v43, 0.0  ;;  %v720_v45 = vpop.f32.mrb[3].mxu1 }
 0x2c6   : > { %v522_v46 = vadd.f32 1e-05, %v521_v44 }
 0x2c8   : > { %782 = vrsqrt.f32 %v522_v46 }
 0x2d2   : > { %v783_v47 = vpop.eup %782 }
 0x2d3   : > { %v527_v48 = vrot.slane %v783_v47, %v437_v30 }
 0x2d5   : > { %v528_v50 = vmul.f32 %v527_v48, %v439_v34 }
 0x2d7   : > { %v535_v52 = vmul.f32 %v660_v49, %v528_v50 }
 0x2d9   : > { %v542_v53 = vadd.f32 %v661_v51, %v535_v52 }
 0x2db   : > { %v544_v54 = vmul.f32 0.70710677, %v542_v53  ;;  %v543_v13 = vmul.f32 0.5, %v542_v53 }
 0x2dd   : > { %v547_v55 = vand.u32 2147483647, %v544_v54  ;;  %vm545_vm3 = vcmp.ge.f32.partialorder %v544_v54, 0.0 }
 0x2de   : > { %v546_v11 = vsel %vm545_vm3, 1.0, %v855_v10 }
 0x2df   : > { %v548_v56 = vmul.f32 0.3275911, %v547_v55  ;;  %v561_v58 = vsub.f32 0.0, %v547_v55 }
 0x2e1   : > { %v549_v57 = vadd.f32 1.0, %v548_v56  ;;  %v562_v60 = vmul.f32 %v561_v58, %v547_v55 }
 0x2e3   : > { %784 = vrcp.f32 %v549_v57  ;;  %v563_v63 = vmul.f32 1.442695, %v562_v60 }
 0x2e5   : > { %786 = vpow2.f32 %v563_v63 }
 0x2ed   : > { %v785_v59 = vpop.eup %784 }
 0x2ee   : > { %v552_v61 = vmul.f32 1.0614054, %v785_v59 }
 0x2ef   : > { %v787_v7 = vpop.eup %786 }
 0x2f0   : > { %v553_v62 = vadd.f32 -1.4531521, %v552_v61 }
 0x2f2   : > { %v554_v0 = vmul.f32 %v785_v59, %v553_v62 }
 0x2f4   : > { %v555_v1 = vadd.f32 1.4214138, %v554_v0 }
 0x2f6   : > { %v556_v2 = vmul.f32 %v785_v59, %v555_v1 }
 0x2f8   : > { %v557_v3 = vadd.f32 -0.28449672, %v556_v2 }
 0x2fa   : > { %v558_v4 = vmul.f32 %v785_v59, %v557_v3 }
 0x2fc   : > { %v559_v5 = vadd.f32 0.2548296, %v558_v4 }
 0x2fe   : > { %v560_v6 = vmul.f32 %v785_v59, %v559_v5 }
 0x300   : > { %v565_v8 = vmul.f32 %v787_v7, %v560_v6 }
 0x302   : > { %v566_v9 = vsub.f32 1.0, %v565_v8 }
 0x304   : > { %v567_v12 = vmul.f32 %v566_v9, %v546_v11 }
 0x306   : > { %v568_v14 = vadd.f32 1.0, %v567_v12 }
 0x308   : > { %v569_v15 = vmul.f32 %v568_v14, %v543_v13 }
 0x30a   : > { %570 = vst.msk [vmem:[%s242_s13] sm:$0xff] %vm354_vm2, %v569_v15 }
 0x30b   : > { %801 = shalt.err (!%p798_p3)
}
 0x30c   : > { %s802_s28 = scalar_lea.hbm %s996_s17, 128  ;;  %s806_s10 = scalar_lea.hbm %s1045_s6, 256 }
 0x30d   : > { %p803_p4 = scmp.ne.s32.totalorder %s996_s17, %s802_s28  ;;  %p807_p9 = scmp.lt.u32.totalorder %s996_s17, %s1045_s6 }
 0x30e   : > { %p808_p10 = scmp.lt.u32.totalorder %s806_s10, %s802_s28  ;;  %p810_p12 = scmp.lt.u32.totalorder %s802_s28, %s996_s17 }
 0x30f   : > { %p804_p7 = pnand %p803_p4, %p930_p5 }
 0x310   : > { %p809_p11 = por %p808_p10, %p807_p9 }
 0x311   : > { %p805_p8 = pneg %p804_p7 }
 0x312   : > { %p811_p13 = por %p810_p12, %p809_p11 }
 0x314   : > { %p812_p0 = pnand %p811_p13, %p805_p8 }
 0x316   : > { %815 = shalt.err (!%p812_p0)
}
 0x317   : > { %733 = dma.vmem_to_hbm [thread:$0]  (%p930_p5), %s998_s14, 128, %s996_s17, %s572_s18  }
 0x318 PF: > { %p739_p1 = scmp.ge.s32.totalorder %s850_s24, 2  ;;  %s597_s13 = sand.u32 1, %s838_s21  }
 0x319   : > { %s598_s15 = scalar_lea.sflag [#allocation3], %s597_s13 }
 0x31a   : > { %p736_p2 = pnand %p739_p1, %p934_p6 }
 0x31c   : > { %833 = dma.done.wait (!%p736_p2), %s598_s15, 128  }
 0x31d   : > { %835 = vsyncadd (!%p736_p2), %s598_s15, 4294967168  ;;  %p16_p3 = scmp.ge.s32.totalorder %s917_s27, 4   ;;  %s1048_s21 = smov %s842_s22 }
 0x31e   : > { %s1049_s22 = smov %s846_s23  ;;  %s1050_s23 = smov %s928_s30 }
 0x31f   : > { %s1051_s24 = smov %s917_s27  ;;  %18 = sbr.rel (!%p16_p3) target bundleno = 3 (0x3), region = 79 }
 0x326   :  { %603 = vsyncpa [#allocation3], 1 }
 0x327   :  { %605 = vsyncpa [#allocation3 + $0x1], 1 }

</bundles_post_ra>
